<compile_context>
chip_gen: v7x
topology: tpu7x:2x2x1
jax: 0.10.0
libtpu: 0.0.40
codegen_flags: <defaults>
</compile_context>

<pallas_src>
import jax
import jax.numpy as jnp
from jax.experimental import pallas as pl
from jax.experimental.pallas import tpu as pltpu


def _round_up(x: int, m: int) -> int:
    return ((x + m - 1) // m) * m


def _vmem_capacity_bytes() -> int:
    """Physical VMEM per TensorCore; fall back to the v7x-safe 64 MiB."""
    try:
        return int(pltpu.get_tpu_info().vmem_capacity_bytes)
    except Exception:
        return 64 << 20


def _linear_kernel_single_k(x_ref, w_ref, b_ref, o_ref):
    """Whole d_in in one K tile: no accumulator, no pl.when, bias fused.

    x_ref: (tm, K)   activation tile
    w_ref: (K, tn)   weight tile, already transposed to (d_in, d_out) layout
    b_ref: (1, tn)   bias tile for this N block
    o_ref: (tm, tn)  output tile
    """
    o_ref[...] = (
        jnp.dot(x_ref[...], w_ref[...], preferred_element_type=jnp.float32)
        + b_ref[...].astype(jnp.float32)
    ).astype(o_ref.dtype)


def _linear_kernel_multi_k(x_ref, w_ref, b_ref, o_ref, acc_ref):
    """One (tm, tn) output tile, accumulated over the K grid axis.

    x_ref: (tm, tk)   activation tile
    w_ref: (tk, tn)   weight tile (transposed layout, plain NN contraction)
    b_ref: (1,  tn)   bias tile
    o_ref: (tm, tn)   output tile
    acc_ref: (tm, tn) f32 VMEM accumulator scratch
    """
    k = pl.program_id(2)

    @pl.when(k == 0)
    def _():
        # Seed the accumulator with the bias -> no extra add in the epilogue.
        acc_ref[...] = jnp.broadcast_to(
            b_ref[...].astype(jnp.float32), acc_ref.shape
        )

    acc_ref[...] += jnp.dot(
        x_ref[...], w_ref[...], preferred_element_type=jnp.float32
    )

    @pl.when(k == pl.num_programs(2) - 1)
    def _():
        o_ref[...] = acc_ref[...].astype(o_ref.dtype)


@jax.jit
def nn_lin_regr_forward(x, weight, bias):
    """Equivalent to torch.nn.Linear: y = x @ weight.T + bias."""
    batch, d_in = x.shape
    d_out, d_in_w = weight.shape
    assert d_in == d_in_w, "weight / input d_in mismatch"

    in_dt = x.dtype
    in_is = jnp.dtype(in_dt).itemsize
    out_is = in_is

    # ---- generation-aware VMEM budget ----------------------------------
    cap = _vmem_capacity_bytes()
    # ~24 MiB working-set budget on v7x (64 MiB physical), ~48 MiB on v5e/v6e.
    budget = min(cap * 3 // 8, 48 << 20)

    # ---- tile sizes ------------------------------------------------------
    tm = min(512, _round_up(batch, 8))     # sublane-aligned
    tn = min(512, _round_up(d_out, 128))   # lane-dense output (unmasked vst)

    def working_set(tk, multi_k):
        return (
            2 * tm * tk * in_is            # x tile, double-buffered
            + 2 * tk * tn * in_is          # weight tile, double-buffered
            + 2 * tn * in_is               # bias tile, double-buffered
            + 2 * tm * tn * out_is         # output tile, double-buffered
            + (tm * tn * 4 if multi_k else 0)  # f32 accumulator
        )

    tk_full = _round_up(d_in, 128)
    if working_set(tk_full, False) <= budget:
        tk, multi_k = tk_full, False        # single-K fast path
    else:
        tk, multi_k = 128, True
        for cand in (2048, 1024, 512, 256):
            if cand < tk_full and working_set(cand, True) <= budget:
                tk, multi_k = cand, True
                break

    M = _round_up(batch, tm)
    N = _round_up(d_out, tn)
    K = _round_up(d_in, tk)

    # ---- operand prep (pad only when actually needed) --------------------
    # Pre-transpose the weight to (d_in, d_out): parameter transpose is
    # amortized / absorbed by XLA layout, and the kernel then needs no
    # in-kernel transpose at all.
    w_t = weight.T
    x_p = x if (M, K) == (batch, d_in) else jnp.pad(
        x, ((0, M - batch), (0, K - d_in)))
    w_p = w_t if (K, N) == (d_in, d_out) else jnp.pad(
        w_t, ((0, K - d_in), (0, N - d_out)))
    b_p = (bias if N == d_out else jnp.pad(bias, (0, N - d_out))).reshape(1, N)

    grid_m, grid_n, grid_k = M // tm, N // tn, K // tk

    # ---- cost estimate: count operand re-streaming across the grid -------
    cost = pl.CostEstimate(
        flops=2 * batch * d_out * d_in,
        transcendentals=0,
        bytes_accessed=int(
            x_p.size * in_is * grid_n      # x re-read once per N block
            + w_p.size * in_is * grid_m    # weight re-read once per M block
            + b_p.size * in_is * grid_m
            + M * N * out_is
        ),
    )

    est = working_set(tk, multi_k)
    vmem_limit = int(min(cap * 3 // 4, max(32 << 20, 2 * est)))

    if multi_k:
        grid = (grid_m, grid_n, grid_k)
        in_specs = [
            pl.BlockSpec((tm, tk), lambda i, j, k: (i, k)),   # x
            pl.BlockSpec((tk, tn), lambda i, j, k: (k, j)),   # weight.T
            pl.BlockSpec((1, tn), lambda i, j, k: (0, j)),    # bias
        ]
        out_spec = pl.BlockSpec((tm, tn), lambda i, j, k: (i, j))
        scratch = [pltpu.VMEM((tm, tn), jnp.float32)]
        kernel = _linear_kernel_multi_k
        dims = ("parallel", "parallel", "arbitrary")
    else:
        grid = (grid_m, grid_n)
        in_specs = [
            pl.BlockSpec((tm, K), lambda i, j: (i, 0)),       # x (full K)
            pl.BlockSpec((K, tn), lambda i, j: (0, j)),       # weight.T
            pl.BlockSpec((1, tn), lambda i, j: (0, j)),       # bias
        ]
        out_spec = pl.BlockSpec((tm, tn), lambda i, j: (i, j))
        scratch = []
        kernel = _linear_kernel_single_k
        dims = ("parallel", "parallel")

    out = pl.pallas_call(
        kernel,
        out_shape=jax.ShapeDtypeStruct((M, N), in_dt),
        grid_spec=pltpu.PrefetchScalarGridSpec(
            num_scalar_prefetch=0,
            grid=grid,
            in_specs=in_specs,
            out_specs=out_spec,
            scratch_shapes=scratch,
        ),
        compiler_params=pltpu.CompilerParams(
            dimension_semantics=dims,
            vmem_limit_bytes=vmem_limit,
        ),
        cost_estimate=cost,
    )(x_p, w_p, b_p)

    # Slice away the lane/row padding (no-op when already aligned).
    if (M, N) == (batch, d_out):
        return out
    return out[:batch, :d_out]


if __name__ == "__main__":
    # Module config: d_in=32, d_out=1 (default), float32; small batch.
    d_in, d_out, batch = 32, 1, 8

    key = jax.random.PRNGKey(0)
    kx, kw, kb = jax.random.split(key, 3)

    # Deterministic parameter init (mimics nn.Linear uniform bound 1/sqrt(d_in)).
    bound = 1.0 / (d_in ** 0.5)
    weight = jax.random.uniform(kw, (d_out, d_in), jnp.float32, -bound, bound)
    bias = jax.random.uniform(kb, (d_out,), jnp.float32, -bound, bound)
    x = jax.random.normal(kx, (batch, d_in), jnp.float32)

    y = nn_lin_regr_forward(x, weight, bias)
    jax.block_until_ready(y)

    # Reference check in plain JAX.
    y_ref = x @ weight.T + bias
    assert y.shape == (batch, d_out), y.shape
    assert jnp.allclose(y, y_ref, atol=1e-5, rtol=1e-5), "mismatch vs reference"

    print("KERNEL_OK")
</pallas_src>

<mosaic_0001>
module attributes {stable_mosaic.version = 11 : i64} {
  func.func @_linear_kernel_single_k(%arg0: i32, %arg1: i32, %arg2: memref<8x128xf32, #tpu.memory_space<vmem>>, %arg3: memref<128x128xf32, #tpu.memory_space<vmem>>, %arg4: memref<1x128xf32, #tpu.memory_space<vmem>>, %arg5: memref<8x128xf32, #tpu.memory_space<vmem>>) attributes {dimension_semantics = [#tpu.dimension_semantics<parallel>, #tpu.dimension_semantics<parallel>], iteration_bounds = array<i64: 1, 1>, scalar_prefetch = 0 : i64, scratch_operands = 0 : i64, tpu.core_type = #tpu.core_type<tc>, window_params = [{transform_indices = @transform_0, window_bounds = array<i64: 8, 128>}, {transform_indices = @transform_1, window_bounds = array<i64: 128, 128>}, {transform_indices = @transform_2, window_bounds = array<i64: 1, 128>}, {transform_indices = @transform_3, window_bounds = array<i64: 8, 128>}]} {
    %c0 = arith.constant 0 : index
    %c0_0 = arith.constant 0 : index
    %0 = vector.load %arg2[%c0, %c0_0] : memref<8x128xf32, #tpu.memory_space<vmem>>, vector<8x128xf32>
    %c0_1 = arith.constant 0 : index
    %c0_2 = arith.constant 0 : index
    %1 = vector.load %arg3[%c0_1, %c0_2] : memref<128x128xf32, #tpu.memory_space<vmem>>, vector<128x128xf32>
    %cst = arith.constant dense<0.000000e+00> : vector<8x128xf32>
    %2 = tpu.matmul %0, %1, %cst {dimension_numbers = #tpu.dot_dimension_numbers<[1], [0], [0], [1], [0, 0, 1, 1], [], []>} : vector<8x128xf32>, vector<128x128xf32>, vector<8x128xf32> -> vector<8x128xf32>
    %c0_3 = arith.constant 0 : index
    %c0_4 = arith.constant 0 : index
    %3 = vector.load %arg4[%c0_3, %c0_4] : memref<1x128xf32, #tpu.memory_space<vmem>>, vector<1x128xf32>
    %4 = vector.broadcast %3 : vector<1x128xf32> to vector<8x128xf32>
    %5 = arith.addf %2, %4 : vector<8x128xf32>
    %c0_5 = arith.constant 0 : index
    %c0_6 = arith.constant 0 : index
    %6 = vector.load %arg5[%c0_5, %c0_6] : memref<8x128xf32, #tpu.memory_space<vmem>>, vector<8x128xf32>
    tpu.vector_store %arg5[%c0_5, %c0_6], %5 {strides = array<i32>} : memref<8x128xf32, #tpu.memory_space<vmem>>, vector<8x128xf32>,
    return
  }
  func.func @transform_0(%arg0: i32, %arg1: i32) -> (i32, i32) {
    %c0_i32 = arith.constant 0 : i32
    %c0_i32_0 = arith.constant 0 : i32
    return %arg0, %c0_i32 : i32, i32
  }
  func.func @transform_1(%arg0: i32, %arg1: i32) -> (i32, i32) {
    %c0_i32 = arith.constant 0 : i32
    %c0_i32_0 = arith.constant 0 : i32
    return %c0_i32, %arg1 : i32, i32
  }
  func.func @transform_2(%arg0: i32, %arg1: i32) -> (i32, i32) {
    %c0_i32 = arith.constant 0 : i32
    %c0_i32_0 = arith.constant 0 : i32
    return %c0_i32, %arg1 : i32, i32
  }
  func.func @transform_3(%arg0: i32, %arg1: i32) -> (i32, i32) {
    %c0_i32 = arith.constant 0 : i32
    return %arg0, %arg1 : i32, i32
  }
}

</mosaic_0001>

<bundles_post_ra>
// kernel: nn_lin_regr_forward.1
= control target key start
LH: loop header
LB: loop body
LE: loop exit
PB: predicated region body
PF: predicated region fallthrough
CT: control target
= control target key end

     0   :  { %v193_v0 = vmov 0.0|0.0   ;;  %vm194_vm0 = vmmov 0   ;;  %v195_v4 = vmov 0.0   ;;  %s273_s1 = inlined_call_operand.vmem [shape: f32[128,128], index: 1, kind: input, shape index: {}]   ;;  %s274_s0 = inlined_call_operand.vmem [shape: f32[8,128], index: 0, kind: input, shape index: {}]   ;;  %s275_s2 = inlined_call_operand.vmem [shape: f32[1,128], index: 2, kind: input, shape index: {}]   ;;  %s276_s3 = inlined_call_operand.vmem [shape: f32[8,128], index: 3, kind: output, shape index: {}]  }
   0x1   :  { %166 = vmatprep.subr.bf16.mxu0 %v193_v0  ;;  %v15_v1 = vld [vmem:[%s273_s1] sm:$0xff]  ;;  %v16_v2 = vld [vmem:[%s273_s1 + $0x8] sm:$0xff]  ;;  %v17_v3 = vld [vmem:[%s273_s1 + $0x10] sm:$0xff]  ;;  %163 = vmatprep.mubr.msk.f32.mxu0 %vm194_vm0, %v195_v4 }
   0x2   :  { %v167_v5 = vpack.c.bf16 %v16_v2, %v15_v1  ;;  %v18_v6 = vld [vmem:[%s273_s1 + $0x18] sm:$0xff]  ;;  %v19_v8 = vld [vmem:[%s273_s1 + $0x20] sm:$0xff]  ;;  %v20_v9 = vld [vmem:[%s273_s1 + $0x28] sm:$0xff] }
   0x3   :  { %v170_v7 = vpack.c.bf16 %v18_v6, %v17_v3  ;;  %v173_v10 = vpack.c.bf16 %v20_v9, %v19_v8  ;;  %v21_v11 = vld [vmem:[%s273_s1 + $0x30] sm:$0xff]  ;;  %v22_v12 = vld [vmem:[%s273_s1 + $0x38] sm:$0xff]  ;;  %v23_v14 = vld [vmem:[%s273_s1 + $0x40] sm:$0xff] }
   0x4   :  { %168 = vmatpush3.bf16.msra.mxu0 %v167_v5  ;;  %v176_v13 = vpack.c.bf16 %v22_v12, %v21_v11  ;;  %v24_v15 = vld [vmem:[%s273_s1 + $0x48] sm:$0xff]  ;;  %v25_v17 = vld [vmem:[%s273_s1 + $0x50] sm:$0xff]  ;;  %v26_v18 = vld [vmem:[%s273_s1 + $0x58] sm:$0xff] }
   0x5   :  { %169 = vmatprep.subr.bf16.mxu0 %v193_v0  ;;  %v179_v16 = vpack.c.bf16 %v24_v15, %v23_v14  ;;  %v182_v19 = vpack.c.bf16 %v26_v18, %v25_v17  ;;  %v27_v20 = vld [vmem:[%s273_s1 + $0x60] sm:$0xff]  ;;  %v28_v21 = vld [vmem:[%s273_s1 + $0x68] sm:$0xff]  ;;  %v29_v23 = vld [vmem:[%s273_s1 + $0x70] sm:$0xff] }
   0x6   :  { %v185_v22 = vpack.c.bf16 %v28_v21, %v27_v20  ;;  %v30_v24 = vld [vmem:[%s273_s1 + $0x78] sm:$0xff]  ;;  %v14_v26 = vld [vmem:[%s274_s0] sm:$0xff] }
   0x7   :  { %v188_v25 = vpack.c.bf16 %v30_v24, %v29_v23  ;;  %v113_v27 = vld [vmem:[%s275_s2] ss:$0 sm:$0xff] }
   0x8   :  { %171 = vmatpush3.bf16.msra.mxu0 %v170_v7 }
   0x9   :  { %172 = vmatprep.subr.bf16.mxu0 %v193_v0 }
   0xc   :  { %174 = vmatpush3.bf16.msra.mxu0 %v173_v10 }
   0xd   :  { %175 = vmatprep.subr.bf16.mxu0 %v193_v0 }
  0x10   :  { %177 = vmatpush3.bf16.msra.mxu0 %v176_v13 }
  0x11   :  { %178 = vmatprep.subr.bf16.mxu0 %v193_v0 }
  0x14   :  { %180 = vmatpush3.bf16.msra.mxu0 %v179_v16 }
  0x15   :  { %181 = vmatprep.subr.bf16.mxu0 %v193_v0 }
  0x18   :  { %183 = vmatpush3.bf16.msra.mxu0 %v182_v19 }
  0x19   :  { %184 = vmatprep.subr.bf16.mxu0 %v193_v0 }
  0x1c   :  { %186 = vmatpush3.bf16.msra.mxu0 %v185_v22 }
  0x1d   :  { %187 = vmatprep.subr.bf16.mxu0 %v193_v0 }
  0x20   :  { %189 = vmatpush3.bf16.msra.mxu0 %v188_v25 }
  0x23   :  { %164 = vmatmul.mubr.f32.vlgmr.msra.gmra.mrb[0].mxu0 %v14_v26 }
  0xf6   :  { %v104_v28 = vpop.f32.mrb[0].mxu0 }
  0xf7   :  { %v105_v29 = vadd.f32 %v113_v27, %v104_v28  ;;  %v165_v30 = vpop.f32.mrb[1].mxu0 }
  0xf9   :  { %108 = vst [vmem:[%s276_s3] sm:$0xff] %v105_v29 }

</bundles_post_ra>
